<compile_context>
chip_gen: v7x
topology: tpu7x:2x2x1
jax: 0.10.0
libtpu: 0.0.40
codegen_flags: <defaults>
</compile_context>

<pallas_src>
import functools
import math
from typing import List, Optional, Sequence, Union

import jax
import jax.numpy as jnp
from jax.experimental import pallas as pl
from jax.experimental.pallas import tpu as pltpu


ACTIVATIONS = ("swish", "silu", "relu", "sigmoid")


# ----------------------------------------------------------------------------
# Small helpers
# ----------------------------------------------------------------------------
def _round_up(x: int, m: int) -> int:
    return ((x + m - 1) // m) * m


def _sublane_align(dtype) -> int:
    """Second-to-last-dim alignment for a given dtype's packing."""
    return {4: 8, 2: 16, 1: 32}.get(jnp.dtype(dtype).itemsize, 8)


def _vmem_capacity_bytes() -> int:
    try:
        return int(pltpu.get_tpu_info().vmem_capacity_bytes)
    except Exception:
        return 64 * 1024 * 1024  # conservative (v7x per-TensorCore VMEM)


_VMEM_CAP = _vmem_capacity_bytes()
_VMEM_LIMIT = min(int(_VMEM_CAP * 0.75), 96 * 1024 * 1024)   # scoped VMEM limit
_VMEM_BUDGET = int(_VMEM_LIMIT * 0.8)                        # planning budget


def _apply_activation(x, activation: Optional[str]):
    """Activation on an f32 array; exp/reciprocal go to the EUP slot."""
    if activation in ("swish", "silu"):
        return x * pl.reciprocal(1.0 + jnp.exp(-x), approx=True)
    if activation == "relu":
        return jnp.maximum(x, 0.0)
    if activation == "sigmoid":
        return pl.reciprocal(1.0 + jnp.exp(-x), approx=True)
    return x  # None -> identity


# ----------------------------------------------------------------------------
# Fused whole-MLP kernel (small/medium networks: all params VMEM-resident).
# Grid = (M_pad // TM,); weights/biases use constant index maps.
# ----------------------------------------------------------------------------
def _fused_mlp_kernel(x_ref, *refs, activations):
    o_ref = refs[-1]
    wb_refs = refs[:-1]
    h = x_ref[...].astype(jnp.float32)
    for i, act in enumerate(activations):
        w = wb_refs[2 * i][...].astype(jnp.float32)
        b = wb_refs[2 * i + 1][...].astype(jnp.float32)
        h = jnp.dot(h, w, preferred_element_type=jnp.float32) + b
        h = _apply_activation(h, act)
    o_ref[...] = h.astype(o_ref.dtype)


def _fused_row_tile(rows: int, sub_m: int) -> int:
    """Row tile: >=2 tiles when possible (feeds both v7x TensorCores)."""
    return min(256, max(sub_m, _round_up(-(-rows // 2), sub_m)))


def _fused_vmem_bytes(tm: int, in_dim: int, params, x_dtype, out_dtype) -> int:
    isz = lambda d: jnp.dtype(d).itemsize
    wb = sum(w.size * isz(w.dtype) + b.size * isz(b.dtype) for w, b in params)
    n_last = params[-1][0].shape[1]
    widths = [in_dim] + [w.shape[1] for w, _ in params]
    io = 2 * tm * in_dim * isz(x_dtype) + 2 * tm * n_last * isz(out_dtype)
    inter = 2 * 4 * tm * sum(widths)          # f32 working activations
    return 2 * wb + io + inter


def _mlp_fused(x2d: jax.Array, params, activations, out_dtype) -> jax.Array:
    M, K0 = x2d.shape
    n_last = params[-1][0].shape[1]
    sub_m = _sublane_align(x2d.dtype)

    TM = _fused_row_tile(M, sub_m)
    M_pad = _round_up(M, TM)
    if M_pad != M:
        x2d = jnp.pad(x2d, ((0, M_pad - M), (0, 0)))

    in_specs = [pl.BlockSpec((TM, K0), lambda i: (i, 0))]
    operands = [x2d]
    for (w, bvec) in params:
        kin, nout = w.shape
        in_specs.append(pl.BlockSpec((kin, nout), lambda i: (0, 0)))  # resident
        in_specs.append(pl.BlockSpec((1, nout), lambda i: (0, 0)))    # resident
        operands += [w, bvec.reshape(1, nout)]

    kernel = functools.partial(_fused_mlp_kernel, activations=tuple(activations))

    out = pl.pallas_call(
        kernel,
        out_shape=jax.ShapeDtypeStruct((M_pad, n_last), out_dtype),
        grid_spec=pltpu.PrefetchScalarGridSpec(
            num_scalar_prefetch=0,
            grid=(M_pad // TM,),
            in_specs=in_specs,
            out_specs=pl.BlockSpec((TM, n_last), lambda i: (i, 0)),
        ),
        compiler_params=pltpu.CompilerParams(
            dimension_semantics=("parallel",),
            vmem_limit_bytes=_VMEM_LIMIT,
        ),
    )(*operands)
    return out[:M] if M_pad != M else out


# ----------------------------------------------------------------------------
# Generic per-layer fallback: y = act(x @ w + b), tiled matmul on the MXU.
# Grid = (M tiles, N tiles, K tiles); K (reduction) last, "arbitrary".
# ----------------------------------------------------------------------------
def _linear_act_kernel(x_ref, w_ref, b_ref, o_ref, *acc, activation):
    # If no scratch was allocated the (f32) output block itself is the
    # accumulator: its index_map ignores k, so it stays resident across K.
    acc_ref = acc[0] if acc else o_ref
    k = pl.program_id(2)

    @pl.when(k == 0)
    def _init():
        acc_ref[...] = jnp.zeros_like(acc_ref)

    acc_ref[...] += jnp.dot(
        x_ref[...], w_ref[...], preferred_element_type=jnp.float32
    )

    @pl.when(k == pl.num_programs(2) - 1)
    def _finalize():
        v = acc_ref[...].astype(jnp.float32) + b_ref[...].astype(jnp.float32)
        o_ref[...] = _apply_activation(v, activation).astype(o_ref.dtype)


def _linear_act(x2d: jax.Array, w: jax.Array, b2d: jax.Array,
                activation: Optional[str], out_dtype) -> jax.Array:
    M, K = x2d.shape
    Kw, N = w.shape
    assert K == Kw, (K, Kw)

    xb = jnp.dtype(x2d.dtype).itemsize
    wb = jnp.dtype(w.dtype).itemsize
    ob = jnp.dtype(out_dtype).itemsize
    sub_m = _sublane_align(x2d.dtype)

    # --- tile choices; awkward large dims are padded, never full-dim tiled ---
    if K <= 1024:
        TK, K_pad = K, K                       # full (legal regardless of K)
    else:
        TK = 512                               # multiple of 128
        K_pad = _round_up(K, TK)
    if N <= 512:
        TN, N_pad = N, N
    else:
        TN = 512
        N_pad = _round_up(N, TN)
    if M <= 512:
        TM = _round_up(M, sub_m)
    else:
        TM = 512

    use_acc_scratch = jnp.dtype(out_dtype) != jnp.dtype(jnp.float32)

    def vmem_bytes(tm, tn, tk):
        total = (2 * tm * tk * xb + 2 * tk * tn * wb
                 + 2 * tm * tn * ob + 2 * tn * 4)
        if use_acc_scratch:
            total += tm * tn * 4
        return total

    # Defensive shrink of the row tile if we ever exceed the VMEM budget.
    while vmem_bytes(TM, TN, TK) > _VMEM_BUDGET and TM > sub_m:
        TM = max(sub_m, (TM // 2 // sub_m) * sub_m)
    M_pad = _round_up(M, TM)

    pad_m, pad_k, pad_n = M_pad - M, K_pad - K, N_pad - N
    if pad_m or pad_k:
        x2d = jnp.pad(x2d, ((0, pad_m), (0, pad_k)))
    if pad_k or pad_n:
        w = jnp.pad(w, ((0, pad_k), (0, pad_n)))
    if pad_n:
        b2d = jnp.pad(b2d, ((0, 0), (0, pad_n)))

    grid = (M_pad // TM, N_pad // TN, K_pad // TK)
    kernel = functools.partial(_linear_act_kernel, activation=activation)
    scratch = [pltpu.VMEM((TM, TN), jnp.float32)] if use_acc_scratch else []

    out = pl.pallas_call(
        kernel,
        out_shape=jax.ShapeDtypeStruct((M_pad, N_pad), out_dtype),
        grid_spec=pltpu.PrefetchScalarGridSpec(
            num_scalar_prefetch=0,
            grid=grid,
            in_specs=[
                pl.BlockSpec((TM, TK), lambda i, j, k: (i, k)),   # x tile
                pl.BlockSpec((TK, TN), lambda i, j, k: (k, j)),   # w tile
                pl.BlockSpec((1, TN), lambda i, j, k: (0, j)),    # bias tile
            ],
            out_specs=pl.BlockSpec((TM, TN), lambda i, j, k: (i, j)),
            scratch_shapes=scratch,
        ),
        compiler_params=pltpu.CompilerParams(
            dimension_semantics=("parallel", "parallel", "arbitrary"),
            vmem_limit_bytes=_VMEM_LIMIT,
        ),
    )(x2d, w, b2d)

    if pad_m or pad_n:
        out = out[:M, :N]
    return out


# ----------------------------------------------------------------------------
# MLP wrapper (mirrors the PyTorch module's forward semantics)
# ----------------------------------------------------------------------------
def resolve_activations(out_dims: Sequence[int],
                        activation: Union[List[Optional[str]], str, None],
                        last_layer_no_activation: bool) -> List[Optional[str]]:
    if isinstance(activation, str) or activation is None:
        acts = [activation] * len(out_dims)
    else:
        acts = list(activation)
        assert len(acts) == len(out_dims), \
            "activation and out_dims must have the same length"
    if last_layer_no_activation:
        acts[-1] = None
    for a in acts:
        assert a is None or a in ACTIVATIONS, f"activation {a} not avail."
    return acts


def init_mlp_params(key, in_dim: int, out_dims: Sequence[int],
                    bias: bool = True, dtype=jnp.float32):
    """Weights stored as (in_dim, out_dim): no transpose anywhere."""
    params = []
    d = in_dim
    for od in out_dims:
        key, kw, kb = jax.random.split(key, 3)
        scale = 1.0 / math.sqrt(d)
        w = jax.random.uniform(kw, (d, od), dtype, -scale, scale)
        if bias:
            bvec = jax.random.uniform(kb, (od,), dtype, -scale, scale)
        else:
            bvec = jnp.zeros((od,), dtype)
        params.append((w, bvec))
        d = od
    return params


def mlp_forward(x: jax.Array, params, activations, *,
                force_per_layer: bool = False) -> jax.Array:
    """Equivalent of MLP.forward: sequential Linear+activation layers."""
    assert len(params) == len(activations) >= 1
    lead = x.shape[:-1]
    rows = int(math.prod(lead)) if lead else 1
    h = x.reshape(rows, x.shape[-1])         # free reshape (contiguous merge)
    out_dtype = x.dtype

    sub_m = _sublane_align(h.dtype)
    tm_probe = _fused_row_tile(rows, sub_m)
    fused_ok = (not force_per_layer and
                _fused_vmem_bytes(tm_probe, h.shape[-1], params,
                                  h.dtype, out_dtype) <= _VMEM_BUDGET)

    if fused_ok:
        h = _mlp_fused(h, params, activations, out_dtype)
    else:
        for (w, bvec), act in zip(params, activations):
            h = _linear_act(h, w, bvec.reshape(1, -1), act, out_dtype)
    return h.reshape(*lead, h.shape[-1])


def mlp_reference(x: jax.Array, params, activations) -> jax.Array:
    """Pure-JAX reference with identical semantics."""
    h = x
    for (w, bvec), act in zip(params, activations):
        h = jnp.einsum("...k,kn->...n", h, w) + bvec
        if act in ("swish", "silu"):
            h = h * jax.nn.sigmoid(h)
        elif act == "relu":
            h = jnp.maximum(h, 0.0)
        elif act == "sigmoid":
            h = jax.nn.sigmoid(h)
    return h


if __name__ == "__main__":
    key = jax.random.PRNGKey(0)
    kx, kp1, kp2, kx3, kp3 = jax.random.split(key, 5)

    # --- Config 1: MLP(32, [64,128,16], bias=True, 'swish', last_no_act=True)
    in_dim = 32
    out_dims = [64, 128, 16]
    x = jax.random.normal(kx, (2, 4, 16, in_dim), dtype=jnp.float32)
    params = init_mlp_params(kp1, in_dim, out_dims, bias=True)
    acts = resolve_activations(out_dims, "swish", last_layer_no_activation=True)

    out = mlp_forward(x, params, acts)                       # fused path
    jax.block_until_ready(out)
    ref = mlp_reference(x, params, acts)
    assert out.shape == (2, 4, 16, out_dims[-1])
    assert jnp.allclose(out, ref, rtol=2e-2, atol=2e-2), "mismatch (fused)"

    # Same config through the generic per-layer fallback path.
    out_pl = mlp_forward(x, params, acts, force_per_layer=True)
    jax.block_until_ready(out_pl)
    assert jnp.allclose(out_pl, ref, rtol=2e-2, atol=2e-2), "mismatch (per-layer)"

    # --- Config 2: MLP(32, [16,8], bias=False, ['relu','sigmoid'])
    out_dims2 = [16, 8]
    params2 = init_mlp_params(kp2, in_dim, out_dims2, bias=False)
    acts2 = resolve_activations(out_dims2, ["relu", "sigmoid"],
                                last_layer_no_activation=False)
    out2 = mlp_forward(x, params2, acts2)
    jax.block_until_ready(out2)
    ref2 = mlp_reference(x, params2, acts2)
    assert out2.shape == (2, 4, 16, out_dims2[-1])
    assert jnp.allclose(out2, ref2, rtol=2e-2, atol=2e-2), \
        "mismatch (no-bias / per-layer activations)"

    # --- Config 3: awkward (non 8/128-aligned) dims to exercise row padding
    x3 = jax.random.normal(kx3, (3, 5, 7, 20), dtype=jnp.float32)  # rows=105
    out_dims3 = [40, 24]
    params3 = init_mlp_params(kp3, 20, out_dims3, bias=True)
    acts3 = resolve_activations(out_dims3, "silu", last_layer_no_activation=False)
    ref3 = mlp_reference(x3, params3, acts3)
    out3 = mlp_forward(x3, params3, acts3)                    # fused, padded M
    jax.block_until_ready(out3)
    assert out3.shape == (3, 5, 7, out_dims3[-1])
    assert jnp.allclose(out3, ref3, rtol=2e-2, atol=2e-2), "mismatch (padded fused)"
    out3b = mlp_forward(x3, params3, acts3, force_per_layer=True)
    jax.block_until_ready(out3b)
    assert jnp.allclose(out3b, ref3, rtol=2e-2, atol=2e-2), "mismatch (padded per-layer)"

    print("KERNEL_OK")
</pallas_src>

<mosaic_0001>
module attributes {stable_mosaic.version = 11 : i64} {
  func.func @_fused_mlp_kernel(%arg0: i32, %arg1: memref<64x32xf32, #tpu.memory_space<vmem>>, %arg2: memref<32x64xf32, #tpu.memory_space<vmem>>, %arg3: memref<1x64xf32, #tpu.memory_space<vmem>>, %arg4: memref<64x128xf32, #tpu.memory_space<vmem>>, %arg5: memref<1x128xf32, #tpu.memory_space<vmem>>, %arg6: memref<128x16xf32, #tpu.memory_space<vmem>>, %arg7: memref<1x16xf32, #tpu.memory_space<vmem>>, %arg8: memref<64x16xf32, #tpu.memory_space<vmem>>) attributes {dimension_semantics = [#tpu.dimension_semantics<parallel>], iteration_bounds = array<i64: 2>, scalar_prefetch = 0 : i64, scratch_operands = 0 : i64, tpu.core_type = #tpu.core_type<tc>, window_params = [{transform_indices = @transform_0, window_bounds = array<i64: 64, 32>}, {pipeline_mode = #tpu.pipeline_mode<synchronous>, transform_indices = @transform_1, window_bounds = array<i64: 32, 64>}, {pipeline_mode = #tpu.pipeline_mode<synchronous>, transform_indices = @transform_2, window_bounds = array<i64: 1, 64>}, {pipeline_mode = #tpu.pipeline_mode<synchronous>, transform_indices = @transform_3, window_bounds = array<i64: 64, 128>}, {pipeline_mode = #tpu.pipeline_mode<synchronous>, transform_indices = @transform_4, window_bounds = array<i64: 1, 128>}, {pipeline_mode = #tpu.pipeline_mode<synchronous>, transform_indices = @transform_5, window_bounds = array<i64: 128, 16>}, {pipeline_mode = #tpu.pipeline_mode<synchronous>, transform_indices = @transform_6, window_bounds = array<i64: 1, 16>}, {transform_indices = @transform_7, window_bounds = array<i64: 64, 16>}]} {
    %c0 = arith.constant 0 : index
    %c0_0 = arith.constant 0 : index
    %0 = vector.load %arg1[%c0, %c0_0] : memref<64x32xf32, #tpu.memory_space<vmem>>, vector<64x32xf32>
    %c0_1 = arith.constant 0 : index
    %c0_2 = arith.constant 0 : index
    %1 = vector.load %arg2[%c0_1, %c0_2] : memref<32x64xf32, #tpu.memory_space<vmem>>, vector<32x64xf32>
    %c0_3 = arith.constant 0 : index
    %c0_4 = arith.constant 0 : index
    %2 = vector.load %arg3[%c0_3, %c0_4] : memref<1x64xf32, #tpu.memory_space<vmem>>, vector<1x64xf32>
    %cst = arith.constant dense<0.000000e+00> : vector<64x64xf32>
    %3 = tpu.matmul %0, %1, %cst {dimension_numbers = #tpu.dot_dimension_numbers<[1], [0], [0], [1], [0, 0, 1, 1], [], []>} : vector<64x32xf32>, vector<32x64xf32>, vector<64x64xf32> -> vector<64x64xf32>
    %4 = vector.broadcast %2 : vector<1x64xf32> to vector<64x64xf32>
    %5 = arith.addf %3, %4 : vector<64x64xf32>
    %cst_5 = arith.constant 0.000000e+00 : f32
    %6 = vector.broadcast %cst_5 : f32 to vector<64x64xf32>
    %7 = arith.subf %6, %5 : vector<64x64xf32>
    %8 = math.exp %7 : vector<64x64xf32>
    %cst_6 = arith.constant 1.000000e+00 : f32
    %9 = vector.broadcast %cst_6 : f32 to vector<64x64xf32>
    %10 = arith.addf %9, %8 : vector<64x64xf32>
    %11 = tpu.reciprocal %10 {approx = true} : vector<64x64xf32> -> vector<64x64xf32>
    %12 = arith.mulf %5, %11 : vector<64x64xf32>
    %c0_7 = arith.constant 0 : index
    %c0_8 = arith.constant 0 : index
    %13 = vector.load %arg4[%c0_7, %c0_8] : memref<64x128xf32, #tpu.memory_space<vmem>>, vector<64x128xf32>
    %c0_9 = arith.constant 0 : index
    %c0_10 = arith.constant 0 : index
    %14 = vector.load %arg5[%c0_9, %c0_10] : memref<1x128xf32, #tpu.memory_space<vmem>>, vector<1x128xf32>
    %cst_11 = arith.constant dense<0.000000e+00> : vector<64x128xf32>
    %15 = tpu.matmul %12, %13, %cst_11 {dimension_numbers = #tpu.dot_dimension_numbers<[1], [0], [0], [1], [0, 0, 1, 1], [], []>} : vector<64x64xf32>, vector<64x128xf32>, vector<64x128xf32> -> vector<64x128xf32>
    %16 = vector.broadcast %14 : vector<1x128xf32> to vector<64x128xf32>
    %17 = arith.addf %15, %16 : vector<64x128xf32>
    %cst_12 = arith.constant 0.000000e+00 : f32
    %18 = vector.broadcast %cst_12 : f32 to vector<64x128xf32>
    %19 = arith.subf %18, %17 : vector<64x128xf32>
    %20 = math.exp %19 : vector<64x128xf32>
    %cst_13 = arith.constant 1.000000e+00 : f32
    %21 = vector.broadcast %cst_13 : f32 to vector<64x128xf32>
    %22 = arith.addf %21, %20 : vector<64x128xf32>
    %23 = tpu.reciprocal %22 {approx = true} : vector<64x128xf32> -> vector<64x128xf32>
    %24 = arith.mulf %17, %23 : vector<64x128xf32>
    %c0_14 = arith.constant 0 : index
    %c0_15 = arith.constant 0 : index
    %25 = vector.load %arg6[%c0_14, %c0_15] : memref<128x16xf32, #tpu.memory_space<vmem>>, vector<128x16xf32>
    %c0_16 = arith.constant 0 : index
    %c0_17 = arith.constant 0 : index
    %26 = vector.load %arg7[%c0_16, %c0_17] : memref<1x16xf32, #tpu.memory_space<vmem>>, vector<1x16xf32>
    %cst_18 = arith.constant dense<0.000000e+00> : vector<64x16xf32>
    %27 = tpu.matmul %24, %25, %cst_18 {dimension_numbers = #tpu.dot_dimension_numbers<[1], [0], [0], [1], [0, 0, 1, 1], [], []>} : vector<64x128xf32>, vector<128x16xf32>, vector<64x16xf32> -> vector<64x16xf32>
    %28 = vector.broadcast %26 : vector<1x16xf32> to vector<64x16xf32>
    %29 = arith.addf %27, %28 : vector<64x16xf32>
    %c0_19 = arith.constant 0 : index
    %c0_20 = arith.constant 0 : index
    %30 = vector.load %arg8[%c0_19, %c0_20] : memref<64x16xf32, #tpu.memory_space<vmem>>, vector<64x16xf32>
    tpu.vector_store %arg8[%c0_19, %c0_20], %29 {strides = array<i32>} : memref<64x16xf32, #tpu.memory_space<vmem>>, vector<64x16xf32>,
    return
  }
  func.func @transform_0(%arg0: i32) -> (i32, i32) {
    %c0_i32 = arith.constant 0 : i32
    %c0_i32_0 = arith.constant 0 : i32
    return %arg0, %c0_i32 : i32, i32
  }
  func.func @transform_1(%arg0: i32) -> (i32, i32) {
    %c0_i32 = arith.constant 0 : i32
    %c0_i32_0 = arith.constant 0 : i32
    %c0_i32_1 = arith.constant 0 : i32
    return %c0_i32, %c0_i32_0 : i32, i32
  }
  func.func @transform_2(%arg0: i32) -> (i32, i32) {
    %c0_i32 = arith.constant 0 : i32
    %c0_i32_0 = arith.constant 0 : i32
    %c0_i32_1 = arith.constant 0 : i32
    return %c0_i32, %c0_i32_0 : i32, i32
  }
  func.func @transform_3(%arg0: i32) -> (i32, i32) {
    %c0_i32 = arith.constant 0 : i32
    %c0_i32_0 = arith.constant 0 : i32
    %c0_i32_1 = arith.constant 0 : i32
    return %c0_i32, %c0_i32_0 : i32, i32
  }
  func.func @transform_4(%arg0: i32) -> (i32, i32) {
    %c0_i32 = arith.constant 0 : i32
    %c0_i32_0 = arith.constant 0 : i32
    %c0_i32_1 = arith.constant 0 : i32
    return %c0_i32, %c0_i32_0 : i32, i32
  }
  func.func @transform_5(%arg0: i32) -> (i32, i32) {
    %c0_i32 = arith.constant 0 : i32
    %c0_i32_0 = arith.constant 0 : i32
    %c0_i32_1 = arith.constant 0 : i32
    return %c0_i32, %c0_i32_0 : i32, i32
  }
  func.func @transform_6(%arg0: i32) -> (i32, i32) {
    %c0_i32 = arith.constant 0 : i32
    %c0_i32_0 = arith.constant 0 : i32
    %c0_i32_1 = arith.constant 0 : i32
    return %c0_i32, %c0_i32_0 : i32, i32
  }
  func.func @transform_7(%arg0: i32) -> (i32, i32) {
    %c0_i32 = arith.constant 0 : i32
    %c0_i32_0 = arith.constant 0 : i32
    return %arg0, %c0_i32 : i32, i32
  }
}

</mosaic_0001>

<bundles_post_ra>
// kernel: tpu_custom_call.1
= control target key start
LH: loop header
LB: loop body
LE: loop exit
PB: predicated region body
PF: predicated region fallthrough
CT: control target
= control target key end

     0   :  { %s1215_s24 = smov 0   ;;  %s1368_s0 = inlined_call_operand.vmem [shape: f32[128,32], index: 0, kind: input, shape index: {}]   ;;  %s1369_s1 = inlined_call_operand.vmem [shape: f32[32,64], index: 1, kind: input, shape index: {}]   ;;  %s1370_s2 = inlined_call_operand.vmem [shape: f32[1,64], index: 2, kind: input, shape index: {}]   ;;  %s1371_s3 = inlined_call_operand.vmem [shape: f32[64,128], index: 3, kind: input, shape index: {}]   ;;  %s1372_s4 = inlined_call_operand.vmem [shape: f32[1,128], index: 4, kind: input, shape index: {}]   ;;  %s1373_s5 = inlined_call_operand.vmem [shape: f32[128,16], index: 5, kind: input, shape index: {}]   ;;  %s1374_s6 = inlined_call_operand.vmem [shape: f32[1,16], index: 6, kind: input, shape index: {}]   ;;  %s1375_s7 = inlined_call_operand.vmem [shape: f32[128,16], index: 7, kind: output, shape index: {}]  }
   0x1 LB: > { %s865_s25 = sadd.s32 4294967295, %s1173_s24   ;;  %p869_p0 = scmp.ge.s32.totalorder %s1173_s24, 1  ;;  %s1173_s24 = sphi %s1215_s24, %s17_s24  }
   0x2   : > { %p238_p1 = scmp.lt.s32.totalorder %s1173_s24, 3 }
   0x4   : > { %p239_p2 = pnand %p869_p0, %p238_p1 }
   0x5   : > { %v290_v0 = vld [vmem:[%s1369_s1] sm:$0xff] (!%p239_p2)  ;;  %v291_v1 = vld [vmem:[%s1369_s1 + $0x8] sm:$0xff] (!%p239_p2)  ;;  %v292_v2 = vld [vmem:[%s1369_s1 + $0x10] sm:$0xff] (!%p239_p2)  ;;  %s870_s9 = sshll.u32 (!%p239_p2), %s865_s25, 3  ;;  %vm301_vm0 = vcmask (!%p239_p2), 261120   ;;  %vm494_vm1 = vcmask (!%p239_p2), 523264  }
   0x6   : > { %242 = sbr.rel (%p239_p2) target bundleno = 741 (0x2e5), region = 48  ;;  %v1039_v3 = vpack.c.bf16 (!%p239_p2), %v291_v1, %v290_v0  ;;  %v293_v4 = vld [vmem:[%s1369_s1 + $0x18] sm:$0xff] (!%p239_p2)  ;;  %p271_p3 = scmp.lt.s32.totalorder (!%p239_p2), %s870_s9, 15  ;;  %v479_v14 = vld [vmem:[%s1371_s3] sm:$0xff] (!%p239_p2)  ;;  %v480_v15 = vld [vmem:[%s1371_s3 + $0x8] sm:$0xff] (!%p239_p2)  ;;  %vm800_vm2 = vcmask (!%p239_p2), 130048  }
   0x7   : > { %v1043_v5 = vpack.c.bf16 (!%p239_p2), %v293_v4, %v292_v2  ;;  %v1047_v16 = vpack.c.bf16 (!%p239_p2), %v480_v15, %v479_v14  ;;  %v481_v17 = vld [vmem:[%s1371_s3 + $0x10] sm:$0xff] (!%p239_p2)  ;;  %v482_v18 = vld [vmem:[%s1371_s3 + $0x18] sm:$0xff] (!%p239_p2)  ;;  %v483_v20 = vld [vmem:[%s1371_s3 + $0x20] sm:$0xff] (!%p239_p2) }
   0x8   : > { %1040 = vmatprep.subr.bf16.mxu1 (!%p239_p2), %v1039_v3  ;;  %v1051_v19 = vpack.c.bf16 (!%p239_p2), %v482_v18, %v481_v17  ;;  %v484_v21 = vld [vmem:[%s1371_s3 + $0x28] sm:$0xff] (!%p239_p2)  ;;  %v485_v23 = vld [vmem:[%s1371_s3 + $0x30] sm:$0xff] (!%p239_p2)  ;;  %v486_v24 = vld [vmem:[%s1371_s3 + $0x38] sm:$0xff] (!%p239_p2) }
   0x9   : > { %1042 = vmatpush3.bf16.msra.mxu1 (!%p239_p2), %v1039_v3  ;;  %v1055_v22 = vpack.c.bf16 (!%p239_p2), %v484_v21, %v483_v20  ;;  %v1059_v25 = vpack.c.bf16 (!%p239_p2), %v486_v24, %v485_v23  ;;  %v874_v26 = vld [vmem:[%s1370_s2] ss:$0 sm:$0xff] (!%p239_p2) }
   0xa   : > { %1044 = vmatprep.subr.bf16.mxu1 (!%p239_p2), %v1043_v5 }
   0xd   : > { %s1377_s9 = smov (!%p271_p3, %s870_s9), 15  ;;  %1046 = vmatpush3.bf16.msra.mxu1 %v1043_v5 }
   0xe   : > { %s871_s12 = sshll.u32 %s1377_s9, 3  ;;  %1048 = vmatprep.subr.bf16.mxu1 %v1047_v16 }
   0xf   : > { %s274_s15 = scalar_lea.vmem %s1368_s0, %s871_s12  ;;  %s280_s11 = scalar_lea.vmem %s1375_s7, %s871_s12 }
  0x10   : > { %v282_v6 = vld [vmem:[%s274_s15] sm:$0xff]  ;;  %v283_v7 = vld [vmem:[%s274_s15 + $0x8] sm:$0xff]  ;;  %v284_v8 = vld [vmem:[%s274_s15 + $0x10] sm:$0xff] }
  0x11   : > { %955 = vmatprep.mubr.msk.f32.mxu1 %vm301_vm0, %v282_v6  ;;  %v285_v9 = vld [vmem:[%s274_s15 + $0x18] sm:$0xff]  ;;  %v286_v10 = vld [vmem:[%s274_s15 + $0x20] sm:$0xff]  ;;  %v287_v11 = vld [vmem:[%s274_s15 + $0x28] sm:$0xff] }
  0x12   : > { %956 = vmatmul.mubr.msk.f32.vlgmr.msra.gmra.mrb[0].mxu1 %vm301_vm0, %v283_v7  ;;  %v288_v12 = vld [vmem:[%s274_s15 + $0x30] sm:$0xff]  ;;  %v289_v13 = vld [vmem:[%s274_s15 + $0x38] sm:$0xff] }
  0x13   : > { %958 = vmatprep.mubr.msk.f32.mxu1 %vm301_vm0, %v284_v8  ;;  %1050 = vmatpush3.bf16.msra.mxu1 %v1047_v16 }
  0x14   : > { %1052 = vmatprep.subr.bf16.mxu1 %v1051_v19 }
  0x16   : > { %959 = vmatmul.mubr.msk.f32.gmra.mrb[2].mxu1 %vm301_vm0, %v285_v9 }
  0x17   : > { %961 = vmatprep.mubr.msk.f32.mxu1 %vm301_vm0, %v286_v10  ;;  %1054 = vmatpush3.bf16.msra.mxu1 %v1051_v19 }
  0x18   : > { %1056 = vmatprep.subr.bf16.mxu1 %v1055_v22 }
  0x1a   : > { %962 = vmatmul.mubr.msk.f32.gmra.mrb[4].mxu1 %vm301_vm0, %v287_v11 }
  0x1b   : > { %964 = vmatprep.mubr.msk.f32.mxu1 %vm301_vm0, %v288_v12  ;;  %1058 = vmatpush3.bf16.msra.mxu1 %v1055_v22 }
  0x1c   : > { %1060 = vmatprep.subr.bf16.mxu1 %v1059_v25 }
  0x1e   : > { %965 = vmatmul.mubr.msk.f32.gmra.mrb[6].mxu1 %vm301_vm0, %v289_v13 }
  0x1f   : > { %1062 = vmatpush3.bf16.msra.mxu1 %v1059_v25 }
  0xe5   : > { %v957_v27 = vpop.f32.mrb[0].mxu1 }
  0xe6   : > { %v1278_v28 = vadd.f32 %v957_v27, %v874_v26  ;;  %v392_v29 = vpop.f32.mrb[1].mxu1  ;;  %v672_v27 = vld [vmem:[%s1373_s5] sm:$0xff] }
  0xe7   : > { %v393_v30 = vadd.f32 %v874_v26, %v392_v29 }
  0xe8   : > { %v432_v31 = vsub.f32 0.0, %v1278_v28 }
  0xe9   : > { %v431_v32 = vsub.f32 0.0, %v393_v30  ;;  %v960_v33 = vpop.f32.mrb[2].mxu1 }
  0xea   : > { %v441_v34 = vmul.f32 1.442695, %v432_v31  ;;  %v1281_v35 = vadd.f32 %v960_v33, %v874_v26  ;;  %v402_v36 = vpop.f32.mrb[3].mxu1  ;;  %v675_v31 = vld [vmem:[%s1373_s5 + $0x18] sm:$0xff]  ;;  %v676_v33 = vld [vmem:[%s1373_s5 + $0x20] sm:$0xff] }
  0xeb   : > { %v439_v37 = vmul.f32 1.442695, %v431_v32  ;;  %v403_v38 = vadd.f32 %v874_v26, %v402_v36  ;;  %v678_v36 = vld [vmem:[%s1373_s5 + $0x30] sm:$0xff] }
  0xec   : > { %1103 = vpow2.f32 %v441_v34  ;;  %v434_v39 = vsub.f32 0.0, %v1281_v35  ;;  %v677_v34 = vld [vmem:[%s1373_s5 + $0x28] sm:$0xff] }
  0xed   : > { %1105 = vpow2.f32 %v439_v37  ;;  %v433_v40 = vsub.f32 0.0, %v403_v38  ;;  %v963_v41 = vpop.f32.mrb[4].mxu1  ;;  %v679_v37 = vld [vmem:[%s1373_s5 + $0x38] sm:$0xff] }
  0xee   : > { %v445_v42 = vmul.f32 1.442695, %v434_v39  ;;  %v418_v43 = vadd.f32 %v963_v41, %v874_v26  ;;  %v412_v44 = vpop.f32.mrb[5].mxu1  ;;  %v680_v39 = vld [vmem:[%s1373_s5 + $0x40] sm:$0xff] }
  0xef   : > { %v443_v45 = vmul.f32 1.442695, %v433_v40  ;;  %v413_v46 = vadd.f32 %v874_v26, %v412_v44  ;;  %v681_v40 = vld [vmem:[%s1373_s5 + $0x48] sm:$0xff] }
  0xf0   : > { %1107 = vpow2.f32 %v445_v42  ;;  %v436_v47 = vsub.f32 0.0, %v418_v43  ;;  %v1079_v41 = vpack.c.bf16 %v681_v40, %v680_v39  ;;  %v682_v42 = vld [vmem:[%s1373_s5 + $0x50] sm:$0xff] }
  0xf1   : > { %1109 = vpow2.f32 %v443_v45  ;;  %v435_v48 = vsub.f32 0.0, %v413_v46  ;;  %v966_v49 = vpop.f32.mrb[6].mxu1  ;;  %v684_v45 = vld [vmem:[%s1373_s5 + $0x60] sm:$0xff] }
  0xf2   : > { %v449_v50 = vmul.f32 1.442695, %v436_v47  ;;  %v428_v51 = vadd.f32 %v966_v49, %v874_v26  ;;  %v422_v52 = vpop.f32.mrb[7].mxu1  ;;  %v687_v49 = vld [vmem:[%s1373_s5 + $0x78] sm:$0xff] }
  0xf3   : > { %v447_v53 = vmul.f32 1.442695, %v435_v48  ;;  %v423_v54 = vadd.f32 %v874_v26, %v422_v52  ;;  %v686_v48 = vld [vmem:[%s1373_s5 + $0x70] sm:$0xff] }
  0xf4   : > { %1111 = vpow2.f32 %v449_v50  ;;  %v438_v55 = vsub.f32 0.0, %v428_v51  ;;  %v1091_v50 = vpack.c.bf16 %v687_v49, %v686_v48 }
  0xf5   : > { %1113 = vpow2.f32 %v447_v53  ;;  %v437_v56 = vsub.f32 0.0, %v423_v54 }
  0xf6   : > { %v1104_v57 = vpop.eup %1103  ;;  %v453_v58 = vmul.f32 1.442695, %v438_v55 }
  0xf7   : > { %v1106_v59 = vpop.eup %1105  ;;  %v456_v60 = vadd.f32 1.0, %v1104_v57  ;;  %v451_v61 = vmul.f32 1.442695, %v437_v56 }
  0xf8   : > { %v455_v62 = vadd.f32 1.0, %v1106_v59  ;;  %1115 = vpow2.f32 %v453_v58 }
  0xf9   : > { %1117 = vrcp.f32 %v456_v60 }
  0xfa   : > { %v1108_v63 = vpop.eup %1107  ;;  %1119 = vrcp.f32 %v455_v62 }
  0xfb   : > { %v1110_v0 = vpop.eup %1109  ;;  %v458_v1 = vadd.f32 1.0, %v1108_v63  ;;  %1121 = vpow2.f32 %v451_v61 }
  0xfc   : > { %v457_v2 = vadd.f32 1.0, %v1110_v0 }
  0xfd   : > { %1123 = vrcp.f32 %v458_v1 }
  0xfe   : > { %v1112_v3 = vpop.eup %1111  ;;  %1125 = vrcp.f32 %v457_v2 }
  0xff   : > { %v1114_v4 = vpop.eup %1113  ;;  %v460_v5 = vadd.f32 1.0, %v1112_v3 }
 0x100   : > { %v459_v6 = vadd.f32 1.0, %v1114_v4 }
 0x101   : > { %1127 = vrcp.f32 %v460_v5 }
 0x102   : > { %v1116_v7 = vpop.eup %1115  ;;  %1129 = vrcp.f32 %v459_v6 }
 0x103   : > { %v1118_v8 = vpop.eup %1117  ;;  %v462_v9 = vadd.f32 1.0, %v1116_v7 }
 0x104   : > { %v1120_v10 = vpop.eup %1119  ;;  %v472_v13 = vmul.f32 %v1118_v8, %v1278_v28  ;;  %v673_v28 = vld [vmem:[%s1373_s5 + $0x8] sm:$0xff] }
 0x105   : > { %v1122_v11 = vpop.eup %1121  ;;  %v471_v12 = vmul.f32 %v1120_v10, %v393_v30  ;;  %1131 = vrcp.f32 %v462_v9  ;;  %v1063_v29 = vpack.c.bf16 %v673_v28, %v672_v27  ;;  %v674_v30 = vld [vmem:[%s1373_s5 + $0x10] sm:$0xff] }
 0x106   : > { %v461_v14 = vadd.f32 1.0, %v1122_v11  ;;  %v1067_v32 = vpack.c.bf16 %v675_v31, %v674_v30 }
 0x107   : > { %v1124_v15 = vpop.eup %1123  ;;  %983 = vmatprep.mubr.msk.f32.mxu1 %vm494_vm1, %v471_v12  ;;  %1064 = vmatprep.subr.bf16.mxu0 %v1063_v29 }
 0x108   : > { %v1126_v16 = vpop.eup %1125  ;;  %1133 = vrcp.f32 %v461_v14  ;;  %984 = vmatmul.mubr.msk.f32.vlgmr.msra.gmra.mrb[8].mxu1 %vm494_vm1, %v472_v13  ;;  %v474_v18 = vmul.f32 %v1124_v15, %v1281_v35  ;;  %1066 = vmatpush3.bf16.msra.mxu0 %v1063_v29  ;;  %v1071_v35 = vpack.c.bf16 %v677_v34, %v676_v33 }
 0x109   : > { %v473_v17 = vmul.f32 %v1126_v16, %v403_v38  ;;  %1068 = vmatprep.subr.bf16.mxu0 %v1067_v32  ;;  %v1075_v38 = vpack.c.bf16 %v679_v37, %v678_v36 }
 0x10b   : > { %v1128_v19 = vpop.eup %1127  ;;  %986 = vmatprep.mubr.msk.f32.mxu1 %vm494_vm1, %v473_v17 }
 0x10c   : > { %v1130_v20 = vpop.eup %1129  ;;  %987 = vmatmul.mubr.msk.f32.gmra.mrb[10].mxu1 %vm494_vm1, %v474_v18  ;;  %v476_v22 = vmul.f32 %v1128_v19, %v418_v43  ;;  %1070 = vmatpush3.bf16.msra.mxu0 %v1067_v32  ;;  %v683_v43 = vld [vmem:[%s1373_s5 + $0x58] sm:$0xff] }
 0x10d   : > { %v475_v21 = vmul.f32 %v1130_v20, %v413_v46  ;;  %1072 = vmatprep.subr.bf16.mxu0 %v1071_v35  ;;  %v1083_v44 = vpack.c.bf16 %v683_v43, %v682_v42  ;;  %v685_v46 = vld [vmem:[%s1373_s5 + $0x68] sm:$0xff] }
 0x10e   : > { %v1087_v47 = vpack.c.bf16 %v685_v46, %v684_v45 }
 0x10f   : > { %989 = vmatprep.mubr.msk.f32.mxu1 %vm494_vm1, %v475_v21  ;;  %v1132_v23 = vpop.eup %1131 }
 0x110   : > { %990 = vmatmul.mubr.msk.f32.gmra.mrb[12].mxu1 %vm494_vm1, %v476_v22  ;;  %v478_v26 = vmul.f32 %v1132_v23, %v428_v51  ;;  %1074 = vmatpush3.bf16.msra.mxu0 %v1071_v35  ;;  %v883_v51 = vld [vmem:[%s1372_s4] ss:$0 sm:$0xff] }
 0x111   : > { %1076 = vmatprep.subr.bf16.mxu0 %v1075_v38 }
 0x112   : > { %v1134_v24 = vpop.eup %1133 }
 0x113   : > { %v477_v25 = vmul.f32 %v1134_v24, %v423_v54 }
 0x114   : > { %1078 = vmatpush3.bf16.msra.mxu0 %v1075_v38 }
 0x115   : > { %992 = vmatprep.mubr.msk.f32.mxu1 %vm494_vm1, %v477_v25  ;;  %1080 = vmatprep.subr.bf16.mxu0 %v1079_v41 }
 0x116   : > { %993 = vmatmul.mubr.msk.f32.gmra.mrb[14].mxu1 %vm494_vm1, %v478_v26 }
 0x118   : > { %1082 = vmatpush3.bf16.msra.mxu0 %v1079_v41 }
 0x119   : > { %1084 = vmatprep.subr.bf16.mxu0 %v1083_v44 }
 0x11c   : > { %1086 = vmatpush3.bf16.msra.mxu0 %v1083_v44 }
 0x11d   : > { %1088 = vmatprep.subr.bf16.mxu0 %v1087_v47 }
 0x120   : > { %1090 = vmatpush3.bf16.msra.mxu0 %v1087_v47 }
 0x121   : > { %1092 = vmatprep.subr.bf16.mxu0 %v1091_v50 }
 0x124   : > { %1094 = vmatpush3.bf16.msra.mxu0 %v1091_v50 }
 0x1db   : > { %v985_v52 = vpop.f32.mrb[8].mxu1 }
 0x1dc   : > { %v591_v53 = vadd.f32 %v985_v52, %v883_v51  ;;  %v585_v54 = vpop.f32.mrb[9].mxu1  ;;  %v892_v52 = vld [vmem:[%s1374_s6] ss:$0 sm:$0xff] }
 0x1dd   : > { %v586_v55 = vadd.f32 %v883_v51, %v585_v54 }
 0x1de   : > { %v625_v56 = vsub.f32 0.0, %v591_v53 }
 0x1df   : > { %v624_v57 = vsub.f32 0.0, %v586_v55  ;;  %v988_v58 = vpop.f32.mrb[10].mxu1 }
 0x1e0   : > { %v634_v59 = vmul.f32 1.442695, %v625_v56  ;;  %v1345_v60 = vadd.f32 %v988_v58, %v883_v51  ;;  %v595_v61 = vpop.f32.mrb[11].mxu1 }
 0x1e1   : > { %v632_v62 = vmul.f32 1.442695, %v624_v57  ;;  %v596_v63 = vadd.f32 %v883_v51, %v595_v61 }
 0x1e2   : > { %1135 = vpow2.f32 %v634_v59  ;;  %v627_v0 = vsub.f32 0.0, %v1345_v60 }
 0x1e3   : > { %1137 = vpow2.f32 %v632_v62  ;;  %v626_v1 = vsub.f32 0.0, %v596_v63  ;;  %v991_v2 = vpop.f32.mrb[12].mxu1 }
 0x1e4   : > { %v638_v3 = vmul.f32 1.442695, %v627_v0  ;;  %v611_v4 = vadd.f32 %v991_v2, %v883_v51  ;;  %v605_v5 = vpop.f32.mrb[13].mxu1 }
 0x1e5   : > { %v636_v6 = vmul.f32 1.442695, %v626_v1  ;;  %v606_v7 = vadd.f32 %v883_v51, %v605_v5 }
 0x1e6   : > { %1139 = vpow2.f32 %v638_v3  ;;  %v629_v8 = vsub.f32 0.0, %v611_v4 }
 0x1e7   : > { %1141 = vpow2.f32 %v636_v6  ;;  %v628_v9 = vsub.f32 0.0, %v606_v7 }
 0x1e8   : > { %v642_v10 = vmul.f32 1.442695, %v629_v8 }
 0x1e9   : > { %v640_v11 = vmul.f32 1.442695, %v628_v9  ;;  %v994_v12 = vpop.f32.mrb[14].mxu1 }
 0x1ea   : > { %1143 = vpow2.f32 %v642_v10  ;;  %v621_v13 = vadd.f32 %v994_v12, %v883_v51  ;;  %v615_v14 = vpop.f32.mrb[15].mxu1 }
 0x1eb   : > { %1145 = vpow2.f32 %v640_v11  ;;  %v616_v15 = vadd.f32 %v883_v51, %v615_v14 }
 0x1ec   : > { %v1136_v16 = vpop.eup %1135  ;;  %v631_v17 = vsub.f32 0.0, %v621_v13 }
 0x1ed   : > { %v1138_v18 = vpop.eup %1137  ;;  %v649_v19 = vadd.f32 1.0, %v1136_v16  ;;  %v630_v20 = vsub.f32 0.0, %v616_v15 }
 0x1ee   : > { %v648_v21 = vadd.f32 1.0, %v1138_v18  ;;  %v646_v22 = vmul.f32 1.442695, %v631_v17 }
 0x1ef   : > { %1147 = vrcp.f32 %v649_v19  ;;  %v644_v23 = vmul.f32 1.442695, %v630_v20 }
 0x1f0   : > { %v1140_v24 = vpop.eup %1139  ;;  %1149 = vrcp.f32 %v648_v21 }
 0x1f1   : > { %v1142_v25 = vpop.eup %1141  ;;  %v651_v26 = vadd.f32 1.0, %v1140_v24  ;;  %1151 = vpow2.f32 %v646_v22 }
 0x1f2   : > { %v650_v27 = vadd.f32 1.0, %v1142_v25  ;;  %1153 = vpow2.f32 %v644_v23 }
 0x1f3   : > { %1155 = vrcp.f32 %v651_v26 }
 0x1f4   : > { %v1144_v28 = vpop.eup %1143  ;;  %1157 = vrcp.f32 %v650_v27 }
 0x1f5   : > { %v1146_v29 = vpop.eup %1145  ;;  %v653_v30 = vadd.f32 1.0, %v1144_v28 }
 0x1f6   : > { %v652_v31 = vadd.f32 1.0, %v1146_v29 }
 0x1f7   : > { %1159 = vrcp.f32 %v653_v30 }
 0x1f8   : > { %1161 = vrcp.f32 %v652_v31 }
 0x1f9   : > { %v1148_v32 = vpop.eup %1147 }
 0x1fa   : > { %v1150_v33 = vpop.eup %1149  ;;  %v665_v37 = vmul.f32 %v1148_v32, %v591_v53 }
 0x1fb   : > { %v1152_v34 = vpop.eup %1151  ;;  %v664_v35 = vmul.f32 %v1150_v33, %v586_v55 }
 0x1fc   : > { %v1154_v36 = vpop.eup %1153  ;;  %v655_v38 = vadd.f32 1.0, %v1152_v34 }
 0x1fd   : > { %v1156_v39 = vpop.eup %1155  ;;  %v654_v40 = vadd.f32 1.0, %v1154_v36  ;;  %1027 = vmatprep.mubr.f32.mxu0 %v664_v35 }
 0x1fe   : > { %v1158_v41 = vpop.eup %1157  ;;  %1163 = vrcp.f32 %v655_v38  ;;  %1028 = vmatmul.mubr.f32.vlgmr.msra.gmra.mrb[0].mxu0 %v665_v37  ;;  %v667_v43 = vmul.f32 %v1156_v39, %v1345_v60 }
 0x1ff   : > { %v666_v42 = vmul.f32 %v1158_v41, %v596_v63  ;;  %1165 = vrcp.f32 %v654_v40 }
 0x201   : > { %v1160_v44 = vpop.eup %1159  ;;  %1030 = vmatprep.mubr.f32.mxu0 %v666_v42 }
 0x202   : > { %v1162_v45 = vpop.eup %1161  ;;  %1031 = vmatmul.mubr.f32.gmra.mrb[2].mxu0 %v667_v43  ;;  %v669_v47 = vmul.f32 %v1160_v44, %v611_v4 }
 0x203   : > { %v668_v46 = vmul.f32 %v1162_v45, %v606_v7 }
 0x205   : > { %1033 = vmatprep.mubr.f32.mxu0 %v668_v46 }
 0x206   : > { %1034 = vmatmul.mubr.f32.gmra.mrb[4].mxu0 %v669_v47 }
 0x208   : > { %v1164_v48 = vpop.eup %1163 }
 0x209   : > { %v1166_v49 = vpop.eup %1165  ;;  %v671_v51 = vmul.f32 %v1164_v48, %v621_v13 }
 0x20a   : > { %v670_v50 = vmul.f32 %v1166_v49, %v616_v15 }
 0x20c   : > { %1036 = vmatprep.mubr.f32.mxu0 %v670_v50 }
 0x20d   : > { %1037 = vmatmul.mubr.f32.gmra.mrb[6].mxu0 %v671_v51 }
 0x2d1   : > { %v1029_v53 = vpop.f32.mrb[0].mxu0 }
 0x2d2   : > { %v767_v54 = vadd.f32 %v1029_v53, %v892_v52  ;;  %v761_v55 = vpop.f32.mrb[1].mxu0 }
 0x2d3   : > { %v762_v56 = vadd.f32 %v892_v52, %v761_v55 }
 0x2d4   : > { %802 = vst.msk [vmem:[%s280_s11 + $0x8] sm:$0xff] %vm800_vm2, %v767_v54 }
 0x2d5   : > { %801 = vst.msk [vmem:[%s280_s11] sm:$0xff] %vm800_vm2, %v762_v56  ;;  %v1032_v57 = vpop.f32.mrb[2].mxu0 }
 0x2d6   : > { %v777_v58 = vadd.f32 %v1032_v57, %v892_v52  ;;  %v771_v59 = vpop.f32.mrb[3].mxu0 }
 0x2d7   : > { %v772_v60 = vadd.f32 %v892_v52, %v771_v59 }
 0x2d8   : > { %804 = vst.msk [vmem:[%s280_s11 + $0x18] sm:$0xff] %vm800_vm2, %v777_v58 }
 0x2d9   : > { %803 = vst.msk [vmem:[%s280_s11 + $0x10] sm:$0xff] %vm800_vm2, %v772_v60  ;;  %v1035_v61 = vpop.f32.mrb[4].mxu0 }
 0x2da   : > { %v787_v62 = vadd.f32 %v1035_v61, %v892_v52  ;;  %v781_v63 = vpop.f32.mrb[5].mxu0 }
 0x2db   : > { %v782_v0 = vadd.f32 %v892_v52, %v781_v63 }
 0x2dc   : > { %806 = vst.msk [vmem:[%s280_s11 + $0x28] sm:$0xff] %vm800_vm2, %v787_v62 }
 0x2dd   : > { %805 = vst.msk [vmem:[%s280_s11 + $0x20] sm:$0xff] %vm800_vm2, %v782_v0 }
 0x2e0   : > { %v1038_v1 = vpop.f32.mrb[6].mxu0 }
 0x2e1   : > { %v797_v2 = vadd.f32 %v1038_v1, %v892_v52  ;;  %v791_v3 = vpop.f32.mrb[7].mxu0 }
 0x2e2   : > { %v792_v4 = vadd.f32 %v892_v52, %v791_v3 }
 0x2e3   : > { %808 = vst.msk [vmem:[%s280_s11 + $0x38] sm:$0xff] %vm800_vm2, %v797_v2 }
 0x2e4   : > { %807 = vst.msk [vmem:[%s280_s11 + $0x30] sm:$0xff] %vm800_vm2, %v792_v4 }
 0x2e5 PF: > { %s17_s24 = sadd.s32 1, %s1173_s24  }
 0x2e6   : > { %p14_p4 = scmp.ge.s32.totalorder %s17_s24, 4  }
 0x2e8   :  { %16 = sbr.rel (!%p14_p4) target bundleno = 1 (0x1), region = 78 }

</bundles_post_ra>
